<compile_context>
chip_gen: v7x
topology: tpu7x:2x2x1
jax: 0.10.0
libtpu: 0.0.40
codegen_flags: <defaults>
</compile_context>

<pallas_src>
import jax
import jax.numpy as jnp
from jax.experimental import pallas as pl
from jax.experimental.pallas import tpu as pltpu


def _round_up(x, m):
    return ((x + m - 1) // m) * m


def _vmem_capacity_bytes():
    try:
        return int(pltpu.get_tpu_info().vmem_capacity_bytes)
    except Exception:
        # Conservative fallback: v7x has 64 MiB per TensorCore (v5e/v6e: 128).
        return 64 * 1024 * 1024


def _make_ffn_kernel(compute_dtype, acc_in_out, precision):
    """Fused FFN body.  Grid axis 0 = row tiles (parallel), axis 1 = hidden
    chunks (reduction).  If `acc_in_out`, the f32 output block itself is the
    accumulator (it stays resident across the h axis)."""

    def kernel(x_ref, w1_ref, b1_ref, w2_ref, b2_ref, o_ref, *scratch):
        acc_ref = o_ref if acc_in_out else scratch[0]
        h_idx = pl.program_id(1)

        @pl.when(h_idx == 0)
        def _():
            acc_ref[...] = jnp.zeros_like(acc_ref)

        xv = x_ref[...]
        w1v = w1_ref[...]
        w2v = w2_ref[...]
        if compute_dtype is not None:
            xv = xv.astype(compute_dtype)
            w1v = w1v.astype(compute_dtype)
            w2v = w2v.astype(compute_dtype)

        # First matmul (MXU, f32 accumulation) + bias + ReLU for this chunk.
        h = jnp.dot(xv, w1v, preferred_element_type=jnp.float32,
                    precision=precision)
        h = jnp.maximum(h + b1_ref[...].astype(jnp.float32), 0.0)

        # Second matmul: accumulate this chunk's contribution to the output.
        acc_ref[...] += jnp.dot(h.astype(w2v.dtype), w2v,
                                preferred_element_type=jnp.float32,
                                precision=precision)

        # Epilogue: add the output bias exactly once, cast and store.
        @pl.when(h_idx == pl.num_programs(1) - 1)
        def _():
            res = acc_ref[...] + b2_ref[...].astype(jnp.float32)
            o_ref[...] = res if acc_in_out else res.astype(o_ref.dtype)

    return kernel


def feed_forward(x, w1, b1, w2, b2, *, compute_dtype=None, precision=None,
                 tile_m=None, tile_h=None, vmem_budget_bytes=None):
    """relu(x @ w1 + b1) @ w2 + b2.  x: (..., d_model), w1: (d_model, hidden),
    w2: (hidden, d_model).  Matches PyTorch FeedForward.forward()."""
    orig_shape = x.shape
    d_model, hidden = w1.shape
    assert orig_shape[-1] == d_model
    assert w2.shape == (hidden, d_model)
    assert b1.shape == (hidden,) and b2.shape == (d_model,)

    out_dtype = x.dtype
    x2d = x.reshape(-1, d_model)
    M = x2d.shape[0]

    in_size = jnp.dtype(x.dtype).itemsize
    w_size = jnp.dtype(w1.dtype).itemsize
    cmp_size = (jnp.dtype(compute_dtype).itemsize if compute_dtype is not None
                else max(in_size, w_size))
    # Sublane multiple for the row (second-minor) dim of x / out blocks.
    row_mult = {4: 8, 2: 16, 1: 32}.get(in_size, 8)

    # d_model is the lane dim of x / out / acc / w2's N: keep it a multiple
    # of 128 so output stores are unmasked, lane-dense `vst`s.
    D_pad = _round_up(d_model, 128)
    # Hidden is the lane dim of w1/b1 and the sublane dim of w2.
    H_al = _round_up(hidden, 128)
    M_al = _round_up(max(M, 1), row_mult)

    # Accumulate directly in the resident f32 output block (saves
    # tile_m * D_pad * 4 bytes of scratch and an epilogue copy).
    acc_in_out = (jnp.dtype(out_dtype) == jnp.dtype(jnp.float32))

    # ---- Generation-aware VMEM budget --------------------------------------
    vmem_cap = _vmem_capacity_bytes()
    budget = (int(vmem_budget_bytes) if vmem_budget_bytes is not None
              else (vmem_cap * 3) // 4)   # ~96 MiB v5e/v6e, ~48 MiB v7x

    def est(tm, th, w_bufs=2):
        return (2 * tm * D_pad * in_size                 # x blocks (2 bufs)
                + w_bufs * D_pad * th * w_size           # w1 blocks
                + w_bufs * th * D_pad * w_size           # w2 blocks
                + 2 * th * w_size + 2 * D_pad * w_size   # bias blocks
                + 2 * tm * D_pad * in_size               # out blocks
                + (0 if acc_in_out else tm * D_pad * 4)  # f32 accumulator
                + tm * th * 4                            # f32 relu intermediate
                + tm * th * cmp_size                     # its cast for matmul 2
                + 4 * 2**20)                             # compiler scratch headroom

    # ---- Tile selection -----------------------------------------------------
    # tile_h: largest multiple of 128 dividing the aligned hidden size, so
    # weights need no per-call padding whenever hidden % 128 == 0.
    h_cands = [d for d in range(128, H_al + 1, 128) if H_al % d == 0]
    if not h_cands:
        h_cands = [H_al]
    h_cands.sort(reverse=True)

    if tile_h is None:
        hi = 0
        tile_h = h_cands[hi]
    else:
        tile_h = int(tile_h)
        assert tile_h % 128 == 0 or tile_h >= H_al, "tile_h must be lane-aligned"
        hi = None

    if tile_m is None:
        # Keep >= 2 row tiles when possible so both v7x TensorCores get work
        # on small-M / decode shapes (axis 0 is the "parallel" megacore axis).
        cap2 = (_round_up((M_al + 1) // 2, row_mult)
                if M_al >= 2 * row_mult else M_al)
        tile_m = min(1024, M_al, cap2)
        auto_m = True
    else:
        tile_m = max(row_mult, min(_round_up(int(tile_m), row_mult), M_al))
        auto_m = False

    if hi is not None or auto_m:
        # Shrink to fit the budget; keep both tiles >= 256 as long as possible
        # (v6e/v7x MXU is 2x256x256).  Shrink tile_h first: weight HBM traffic
        # depends only on the number of M tiles.
        def can_h():
            return hi is not None and hi + 1 < len(h_cands)

        while est(tile_m, tile_h) > budget and can_h() and h_cands[hi + 1] >= 256:
            hi += 1
            tile_h = h_cands[hi]
        while est(tile_m, tile_h) > budget and auto_m and tile_m > 256:
            tile_m = max(256, _round_up(tile_m // 2, row_mult))
        while est(tile_m, tile_h) > budget and can_h():
            hi += 1
            tile_h = h_cands[hi]
        while est(tile_m, tile_h) > budget and auto_m and tile_m > row_mult:
            tile_m = max(row_mult, _round_up(tile_m // 2, row_mult))
        # TODO(synk): for very large d_model (>~4k on v7x) add a d_model grid
        # axis for the second matmul instead of shrinking tiles below 256.

    M_pad = _round_up(max(M, 1), tile_m)
    H_pad = _round_up(H_al, tile_h)
    n_m = M_pad // tile_m
    n_h = H_pad // tile_h

    # Deeper weight pipelining when small-M / DMA-bound (budget permitting).
    w_bufs = 2
    if M_pad <= 256 and n_h >= 3 and est(tile_m, tile_h, 3) <= budget:
        w_bufs = 3
    est_final = est(tile_m, tile_h, w_bufs)

    # ---- Padding (exact: zero hidden units / lanes contribute zero) --------
    if M_pad != M or D_pad != d_model:
        x2d = jnp.pad(x2d, ((0, M_pad - M), (0, D_pad - d_model)))
    if D_pad != d_model or H_pad != hidden:
        w1 = jnp.pad(w1, ((0, D_pad - d_model), (0, H_pad - hidden)))
        w2 = jnp.pad(w2, ((0, H_pad - hidden), (0, D_pad - d_model)))
    if H_pad != hidden:
        b1 = jnp.pad(b1, ((0, H_pad - hidden),))
    if D_pad != d_model:
        b2 = jnp.pad(b2, ((0, D_pad - d_model),))

    b1_2d = b1.reshape(1, H_pad)
    b2_2d = b2.reshape(1, D_pad)

    # ---- Cost estimate (weights re-streamed once per M tile) ---------------
    flops = 4 * M_pad * D_pad * H_pad
    bytes_accessed = (M_pad * D_pad * in_size                  # x read
                      + 2 * n_m * D_pad * H_pad * w_size       # w1 + w2
                      + n_m * H_pad * w_size + D_pad * w_size  # biases
                      + M_pad * D_pad * in_size)               # out write
    cost = pl.CostEstimate(flops=int(flops), transcendentals=0,
                           bytes_accessed=int(bytes_accessed))

    # Clamp the scoped VMEM limit to (7/8 of) physical VMEM (v7x: 64 MiB).
    vmem_limit = int(min((vmem_cap * 7) // 8,
                         max(32 * 2**20, (est_final * 5) // 4)))

    def wspec(shape, index_map):
        if w_bufs == 2:
            return pl.BlockSpec(shape, index_map)
        return pl.BlockSpec(shape, index_map, pipeline_mode=pl.Buffered(w_bufs))

    kernel = _make_ffn_kernel(compute_dtype, acc_in_out, precision)
    scratch_shapes = (() if acc_in_out
                      else (pltpu.VMEM((tile_m, D_pad), jnp.float32),))

    out = pl.pallas_call(
        kernel,
        out_shape=jax.ShapeDtypeStruct((M_pad, D_pad), out_dtype),
        grid_spec=pltpu.PrefetchScalarGridSpec(
            num_scalar_prefetch=0,
            grid=(n_m, n_h),
            in_specs=[
                pl.BlockSpec((tile_m, D_pad), lambda i, h: (i, 0)),   # x
                wspec((D_pad, tile_h), lambda i, h: (0, h)),          # w1
                pl.BlockSpec((1, tile_h), lambda i, h: (0, h)),       # b1
                wspec((tile_h, D_pad), lambda i, h: (h, 0)),          # w2
                pl.BlockSpec((1, D_pad), lambda i, h: (0, 0)),        # b2
            ],
            out_specs=pl.BlockSpec((tile_m, D_pad), lambda i, h: (i, 0)),
            scratch_shapes=scratch_shapes,
        ),
        compiler_params=pltpu.CompilerParams(
            dimension_semantics=("parallel", "arbitrary"),
            vmem_limit_bytes=vmem_limit),
        cost_estimate=cost,
    )(x2d, w1, b1_2d, w2, b2_2d)

    return out[:M, :d_model].reshape(orig_shape)


def init_params(key, d_model, hidden_size, dtype=jnp.float32):
    # Mimic PyTorch nn.Linear default init: U(-1/sqrt(fan_in), 1/sqrt(fan_in)).
    k1, k2, k3, k4 = jax.random.split(key, 4)
    lim1 = 1.0 / (d_model ** 0.5)
    lim2 = 1.0 / (hidden_size ** 0.5)
    w1 = jax.random.uniform(k1, (d_model, hidden_size), dtype, -lim1, lim1)
    b1 = jax.random.uniform(k2, (hidden_size,), dtype, -lim1, lim1)
    w2 = jax.random.uniform(k3, (hidden_size, d_model), dtype, -lim2, lim2)
    b2 = jax.random.uniform(k4, (d_model,), dtype, -lim2, lim2)
    return w1, b1, w2, b2


if __name__ == "__main__":
    d_model, hidden_size = 128, 512
    key = jax.random.PRNGKey(0)
    kx, kp, kx2, kx3 = jax.random.split(key, 4)
    w1, b1, w2, b2 = init_params(kp, d_model, hidden_size)

    def ref_ffn(xx, a, ab, c, cb):
        return jnp.maximum(xx @ a + ab, 0.0) @ c + cb

    # Test 1: f32, single hidden chunk (accumulate directly in the output).
    x = jax.random.normal(kx, (2, 8, d_model), jnp.float32)
    out = jax.block_until_ready(feed_forward(x, w1, b1, w2, b2))
    ref = ref_ffn(x, w1, b1, w2, b2)
    assert out.shape == x.shape and out.dtype == x.dtype
    assert jnp.allclose(out, ref, atol=1e-4, rtol=1e-4)

    # Test 2: ragged rows (padding path) + multi-step hidden reduction.
    x2 = jax.random.normal(kx2, (3, 5, d_model), jnp.float32)
    out2 = jax.block_until_ready(feed_forward(x2, w1, b1, w2, b2, tile_h=256))
    ref2 = ref_ffn(x2, w1, b1, w2, b2)
    assert out2.shape == x2.shape
    assert jnp.allclose(out2, ref2, atol=1e-4, rtol=1e-4)

    # Test 3: bf16 end-to-end (f32 scratch accumulator); tile_h=128 gives >=3
    # hidden steps at small M and exercises the deeper weight-buffering path.
    out3 = jax.block_until_ready(
        feed_forward(x.astype(jnp.bfloat16),
                     w1.astype(jnp.bfloat16), b1.astype(jnp.bfloat16),
                     w2.astype(jnp.bfloat16), b2.astype(jnp.bfloat16),
                     tile_h=128))
    assert out3.dtype == jnp.bfloat16
    assert jnp.allclose(out3.astype(jnp.float32), ref, atol=5e-2, rtol=5e-2)

    # Test 4: f32 inputs on the opt-in bf16 MXU compute path (f32 accumulate).
    out4 = jax.block_until_ready(
        feed_forward(x, w1, b1, w2, b2, compute_dtype=jnp.bfloat16))
    assert out4.dtype == jnp.float32
    assert jnp.allclose(out4, ref, atol=5e-2, rtol=5e-2)

    # Test 5: d_model / hidden not multiples of 128 (lane/hidden padding paths).
    d2, h2 = 100, 192
    w1b, b1b, w2b, b2b = init_params(jax.random.PRNGKey(1), d2, h2)
    x5 = jax.random.normal(kx3, (2, 3, d2), jnp.float32)
    out5 = jax.block_until_ready(feed_forward(x5, w1b, b1b, w2b, b2b))
    ref5 = ref_ffn(x5, w1b, b1b, w2b, b2b)
    assert out5.shape == x5.shape
    assert jnp.allclose(out5, ref5, atol=1e-4, rtol=1e-4)

    print("KERNEL_OK")
</pallas_src>

<mosaic_0001>
module attributes {stable_mosaic.version = 11 : i64} {
  func.func @kernel(%arg0: i32, %arg1: i32, %arg2: memref<8x128xf32, #tpu.memory_space<vmem>>, %arg3: memref<128x512xf32, #tpu.memory_space<vmem>>, %arg4: memref<1x512xf32, #tpu.memory_space<vmem>>, %arg5: memref<512x128xf32, #tpu.memory_space<vmem>>, %arg6: memref<1x128xf32, #tpu.memory_space<vmem>>, %arg7: memref<8x128xf32, #tpu.memory_space<vmem>>) attributes {dimension_semantics = [#tpu.dimension_semantics<parallel>, #tpu.dimension_semantics<arbitrary>], iteration_bounds = array<i64: 2, 1>, scalar_prefetch = 0 : i64, scratch_operands = 0 : i64, tpu.core_type = #tpu.core_type<tc>, window_params = [{transform_indices = @transform_0, window_bounds = array<i64: 8, 128>}, {transform_indices = @transform_1, window_bounds = array<i64: 128, 512>}, {transform_indices = @transform_2, window_bounds = array<i64: 1, 512>}, {transform_indices = @transform_3, window_bounds = array<i64: 512, 128>}, {pipeline_mode = #tpu.pipeline_mode<synchronous>, transform_indices = @transform_4, window_bounds = array<i64: 1, 128>}, {transform_indices = @transform_5, window_bounds = array<i64: 8, 128>}]} {
    %c0_i32 = arith.constant 0 : i32
    %0 = arith.cmpi eq, %arg1, %c0_i32 : i32
    %1 = arith.extui %0 : i1 to i32
    %c0_i32_0 = arith.constant 0 : i32
    %2 = arith.cmpi ne, %1, %c0_i32_0 : i32
    scf.if %2 {
      %cst_16 = arith.constant 0.000000e+00 : f32
      %19 = vector.broadcast %cst_16 : f32 to vector<8x128xf32>
      %c0_17 = arith.constant 0 : index
      %c0_18 = arith.constant 0 : index
      %20 = vector.load %arg7[%c0_17, %c0_18] : memref<8x128xf32, #tpu.memory_space<vmem>>, vector<8x128xf32>
      tpu.vector_store %arg7[%c0_17, %c0_18], %19 {strides = array<i32>} : memref<8x128xf32, #tpu.memory_space<vmem>>, vector<8x128xf32>,
    } else {
    }
    %c0 = arith.constant 0 : index
    %c0_1 = arith.constant 0 : index
    %3 = vector.load %arg2[%c0, %c0_1] : memref<8x128xf32, #tpu.memory_space<vmem>>, vector<8x128xf32>
    %c0_2 = arith.constant 0 : index
    %c0_3 = arith.constant 0 : index
    %4 = vector.load %arg3[%c0_2, %c0_3] : memref<128x512xf32, #tpu.memory_space<vmem>>, vector<128x512xf32>
    %c0_4 = arith.constant 0 : index
    %c0_5 = arith.constant 0 : index
    %5 = vector.load %arg5[%c0_4, %c0_5] : memref<512x128xf32, #tpu.memory_space<vmem>>, vector<512x128xf32>
    %cst = arith.constant dense<0.000000e+00> : vector<8x512xf32>
    %6 = tpu.matmul %3, %4, %cst {dimension_numbers = #tpu.dot_dimension_numbers<[1], [0], [0], [1], [0, 0, 1, 1], [], []>} : vector<8x128xf32>, vector<128x512xf32>, vector<8x512xf32> -> vector<8x512xf32>
    %c0_6 = arith.constant 0 : index
    %c0_7 = arith.constant 0 : index
    %7 = vector.load %arg4[%c0_6, %c0_7] : memref<1x512xf32, #tpu.memory_space<vmem>>, vector<1x512xf32>
    %8 = vector.broadcast %7 : vector<1x512xf32> to vector<8x512xf32>
    %9 = arith.addf %6, %8 : vector<8x512xf32>
    %cst_8 = arith.constant 0.000000e+00 : f32
    %10 = vector.broadcast %cst_8 : f32 to vector<8x512xf32>
    %11 = arith.maximumf %9, %10 : vector<8x512xf32>
    %c0_9 = arith.constant 0 : index
    %c0_10 = arith.constant 0 : index
    %12 = vector.load %arg7[%c0_9, %c0_10] : memref<8x128xf32, #tpu.memory_space<vmem>>, vector<8x128xf32>
    %cst_11 = arith.constant dense<0.000000e+00> : vector<8x128xf32>
    %13 = tpu.matmul %11, %5, %cst_11 {dimension_numbers = #tpu.dot_dimension_numbers<[1], [0], [0], [1], [0, 0, 1, 1], [], []>} : vector<8x512xf32>, vector<512x128xf32>, vector<8x128xf32> -> vector<8x128xf32>
    %14 = arith.addf %12, %13 : vector<8x128xf32>
    %c0_12 = arith.constant 0 : index
    %c0_13 = arith.constant 0 : index
    %15 = vector.load %arg7[%c0_12, %c0_13] : memref<8x128xf32, #tpu.memory_space<vmem>>, vector<8x128xf32>
    tpu.vector_store %arg7[%c0_12, %c0_13], %14 {strides = array<i32>} : memref<8x128xf32, #tpu.memory_space<vmem>>, vector<8x128xf32>,
    %c0_i32_14 = arith.constant 0 : i32
    %16 = arith.cmpi eq, %arg1, %c0_i32_14 : i32
    %17 = arith.extui %16 : i1 to i32
    %c0_i32_15 = arith.constant 0 : i32
    %18 = arith.cmpi ne, %17, %c0_i32_15 : i32
    scf.if %18 {
      %c0_16 = arith.constant 0 : index
      %c0_17 = arith.constant 0 : index
      %19 = vector.load %arg7[%c0_16, %c0_17] : memref<8x128xf32, #tpu.memory_space<vmem>>, vector<8x128xf32>
      %c0_18 = arith.constant 0 : index
      %c0_19 = arith.constant 0 : index
      %20 = vector.load %arg6[%c0_18, %c0_19] : memref<1x128xf32, #tpu.memory_space<vmem>>, vector<1x128xf32>
      %21 = vector.broadcast %20 : vector<1x128xf32> to vector<8x128xf32>
      %22 = arith.addf %19, %21 : vector<8x128xf32>
      %c0_20 = arith.constant 0 : index
      %c0_21 = arith.constant 0 : index
      %23 = vector.load %arg7[%c0_20, %c0_21] : memref<8x128xf32, #tpu.memory_space<vmem>>, vector<8x128xf32>
      tpu.vector_store %arg7[%c0_20, %c0_21], %22 {strides = array<i32>} : memref<8x128xf32, #tpu.memory_space<vmem>>, vector<8x128xf32>,
    } else {
    }
    return
  }
  func.func @transform_0(%arg0: i32, %arg1: i32) -> (i32, i32) {
    %c0_i32 = arith.constant 0 : i32
    %c0_i32_0 = arith.constant 0 : i32
    return %arg0, %c0_i32 : i32, i32
  }
  func.func @transform_1(%arg0: i32, %arg1: i32) -> (i32, i32) {
    %c0_i32 = arith.constant 0 : i32
    %c0_i32_0 = arith.constant 0 : i32
    return %c0_i32, %arg1 : i32, i32
  }
  func.func @transform_2(%arg0: i32, %arg1: i32) -> (i32, i32) {
    %c0_i32 = arith.constant 0 : i32
    %c0_i32_0 = arith.constant 0 : i32
    return %c0_i32, %arg1 : i32, i32
  }
  func.func @transform_3(%arg0: i32, %arg1: i32) -> (i32, i32) {
    %c0_i32 = arith.constant 0 : i32
    %c0_i32_0 = arith.constant 0 : i32
    return %arg1, %c0_i32 : i32, i32
  }
  func.func @transform_4(%arg0: i32, %arg1: i32) -> (i32, i32) {
    %c0_i32 = arith.constant 0 : i32
    %c0_i32_0 = arith.constant 0 : i32
    %c0_i32_1 = arith.constant 0 : i32
    return %c0_i32, %c0_i32_0 : i32, i32
  }
  func.func @transform_5(%arg0: i32, %arg1: i32) -> (i32, i32) {
    %c0_i32 = arith.constant 0 : i32
    %c0_i32_0 = arith.constant 0 : i32
    return %arg0, %c0_i32 : i32, i32
  }
}

</mosaic_0001>

<bundles_post_ra>
// kernel: tpu_custom_call.1
= control target key start
LH: loop header
LB: loop body
LE: loop exit
PB: predicated region body
PF: predicated region fallthrough
CT: control target
= control target key end

     0   :  { %10 = vsyncpa [#allocation3], 0  ;;  %s1684_s0 = inlined_call_operand.hbm [shape: f32[16,128], index: 0, kind: input, shape index: {}]   ;;  %s1685_s1 = inlined_call_operand.hbm [shape: f32[128,512], index: 1, kind: input, shape index: {}]   ;;  %s1686_s2 = inlined_call_operand.vmem [shape: f32[1,512], index: 2, kind: input, shape index: {}]   ;;  %s1687_s3 = inlined_call_operand.hbm [shape: f32[512,128], index: 3, kind: input, shape index: {}]   ;;  %s1688_s4 = inlined_call_operand.vmem [shape: f32[1,128], index: 4, kind: input, shape index: {}]   ;;  %s1689_s5 = inlined_call_operand.hbm [shape: f32[16,128], index: 5, kind: output, shape index: {}]  }
   0x1   :  { %12 = vsyncpa [#allocation3 + $0x1], 0 }
   0x2   :  { %13 = vsyncpa [#allocation6], 0 }
   0x3   :  { %14 = vsyncpa [#allocation4], 0 }
   0x4   :  { %16 = vsyncpa [#allocation4 + $0x1], 0  ;;  %s1421_s18 = smov 0   ;;  %s1423_s19 = smov 0  }
   0x5   :  { %s1425_s20 = smov 0   ;;  %s1427_s21 = smov 0  }
   0x6   :  { %s1429_s22 = smov 0   ;;  %s1431_s23 = smov 0  }
   0x7 LB: > { %s903_s24 = sadd.s32 4294967295, %s1380_s23   ;;  %s904_s25 = sadd.s32 4294967294, %s1380_s23   ;;  %s1380_s23 = sphi %s1431_s23, %s22_s23   ;;  %s1376_s22 = sphi %s1429_s22, %s1711_s22   ;;  %s1372_s21 = sphi %s1427_s21, %s1710_s21   ;;  %s1368_s20 = sphi %s1425_s20, %s1709_s20   ;;  %s1364_s19 = sphi %s1423_s19, %s1708_s19   ;;  %s1360_s18 = sphi %s1421_s18, %s1707_s18  }
   0x8   : > { %p54_p0 = scmp.ne.s32.totalorder %s1364_s19, %s1360_s18  ;;  %p1455_p1 = scmp.eq.s32.totalorder %s903_s24, 0 }
   0x9   : > { %p1459_p2 = scmp.eq.s32.totalorder %s903_s24, 1  ;;  %p183_p3 = scmp.eq.s32.totalorder %s904_s25, 1 }
   0xa   : > { %s1694_s26 = scalar_select %p1455_p1, 1, 0 }
   0xb   : > { %p1465_p4 = por %p1455_p1, %p54_p0  ;;  %p905_p5 = scmp.ge.s32.totalorder %s1380_s23, 1 }
   0xc   : > { %p1470_p6 = por %p183_p3, %p54_p0  ;;  %p190_p7 = scmp.lt.s32.totalorder %s1380_s23, 3 }
   0xd   : > { %s1696_s28 = scalar_select %p1465_p4, 1, 0 }
   0xe   : > { %s1697_s29 = scalar_select %p1470_p6, 1, 0 }
   0xf   : > { %p1475_p8 = pnand %p905_p5, %p190_p7  ;;  %s1382_s6 = smov [#allocation5]  }
  0x10   : > { %s205_s7 = sshll.u32 %s1382_s6, 4  ;;  %s1383_s9 = smov [#allocation7]   ;;  %s1479_s7 = int_to_ptr.vmem [resolvable:$true] %s205_s7 }
  0x11   : > { %p1132_p9 = pneg %p1475_p8  ;;  %s229_s10 = sshll.u32 %s1383_s9, 4  ;;  %s1490_s10 = int_to_ptr.vmem [resolvable:$true] %s229_s10 }
  0x12   : > { %s1208_s13 = scalar_lea.hbm %s1685_s1, 8192 }
  0x13   : > { %p1486_p11 = pnand %p1132_p9, %p1455_p1  ;;  %p1209_p12 = scmp.ne.s32.totalorder %s1685_s1, %s1208_s13 }
  0x14   : > { %p1215_p5 = scmp.lt.u32.totalorder %s1208_s13, %s1685_s1 }
  0x15   : > { %p1210_p13 = pneg %p1486_p11 }
  0x17   : > { %p1211_p0 = pnand %p1210_p13, %p1209_p12 }
  0x19   : > { %p1212_p3 = pneg %p1211_p0 }
  0x1b   : > { %p1217_p7 = pnand %p1215_p5, %p1212_p3 }
  0x1d   : > { %1220 = shalt.err (!%p1217_p7)
}
  0x1e   : > { %s1221_s24 = scalar_lea.vmem %s1479_s7, 8192  ;;  %p1229_p1 = scmp.lt.s32.totalorder %s1479_s7, %s1479_s7 }
  0x1f   : > { %p1222_p9 = scmp.ne.s32.totalorder %s1479_s7, %s1221_s24  ;;  %p1230_p12 = scmp.lt.s32.totalorder %s1221_s24, %s1221_s24 }
  0x21   : > { %p1224_p10 = pnand %p1222_p9, %p1210_p13  ;;  %p1231_p0 = por %p1230_p12, %p1229_p1 }
  0x23   : > { %p1225_p6 = pneg %p1224_p10 }
  0x25   : > { %p1232_p4 = pnand %p1231_p0, %p1225_p6 }
  0x27   : > { %1235 = shalt.err (!%p1232_p4)
}
  0x28   : > { %s1384_s25 = smov 512   ;;  %s1385_s6 = smov 32  }
  0x29   : > { %1135 = dma.hbm_to_vmem [thread:$0]  (!%p1486_p11), %s1685_s1, 8192, %s1479_s7, [#allocation6], %s1384_s25, %s1384_s25, %s1385_s6  }
  0x2a   : > { %s1236_s14 = scalar_lea.hbm %s1687_s3, 8192 }
  0x2b   : > { %p1237_p1 = scmp.ne.s32.totalorder %s1687_s3, %s1236_s14  ;;  %p1243_p10 = scmp.lt.u32.totalorder %s1236_s14, %s1687_s3 }
  0x2d   : > { %p1239_p4 = pnand %p1237_p1, %p1210_p13 }
  0x2f   : > { %p1240_p6 = pneg %p1239_p4 }
  0x31   : > { %p1245_p3 = pnand %p1243_p10, %p1240_p6 }
  0x33   : > { %1248 = shalt.err (!%p1245_p3)
}
  0x34   : > { %s1249_s7 = scalar_lea.vmem %s1490_s10, 8192  ;;  %p1257_p12 = scmp.lt.s32.totalorder %s1490_s10, %s1490_s10 }
  0x35   : > { %p1250_p5 = scmp.ne.s32.totalorder %s1490_s10, %s1249_s7  ;;  %p1258_p0 = scmp.lt.s32.totalorder %s1249_s7, %s1249_s7 }
  0x37   : > { %p1252_p7 = pnand %p1250_p5, %p1210_p13  ;;  %p1259_p1 = por %p1258_p0, %p1257_p12 }
  0x39   : > { %p1253_p9 = pneg %p1252_p7 }
  0x3b   : > { %p1260_p4 = pnand %p1259_p1, %p1253_p9 }
  0x3d   : > { %1263 = shalt.err (!%p1260_p4)
}
  0x3e   : > { %s1386_s25 = smov 128   ;;  %s1387_s6 = smov 8  }
  0x3f   : > { %1138 = dma.hbm_to_vmem [thread:$0]  (!%p1486_p11), %s1687_s3, 8192, %s1490_s10, [#allocation6], %s1386_s25, %s1386_s25, %s1387_s6  }
  0x40   : > { %s34_s12 = sadd.s32 1, %s1376_s22  ;;  %s41_s13 = sadd.s32 1, %s1368_s20 }
  0x41   : > { %p36_p13 = scmp.ge.s32.totalorder %s34_s12, 2  ;;  %p48_p6 = scmp.ne.s32.totalorder %s1368_s20, %s1364_s19 }
  0x42   : > { %p49_p10 = scmp.eq.s32.totalorder %s1380_s23, 0  ;;  %p1149_p3 = scmp.lt.s32.totalorder %s1380_s23, 2 }
  0x43   : > { %s1713_s12 = smov (%p36_p13, %s34_s12), 0  ;;  %p1554_p7 = por %p1459_p2, %p48_p6 }
  0x44   : > { %p50_p5 = por %p49_p10, %p48_p6  ;;  %s38_s8 = ssub.s32 %s1376_s22, %s1713_s12 }
  0x45   : > { %s1700_s14 = scalar_select %p1554_p7, 1, 0 }
  0x46   : > { %s246_s15 = sand.u32 1, %s1368_s20   ;;  %p39_p9 = scmp.eq.s32.totalorder %s38_s8, 0 }
  0x47   : > { %s910_s10 = sshll.u32 %s246_s15, 3  ;;  %s911_s16 = sshll.u32 %s1376_s22, 7 }
  0x48   : > { %s1563_s17 = scalar_select %p39_p9, %s1368_s20, %s41_s13  }
  0x49   : > { %s1568_s25 = scalar_lea.hbm %s1684_s0, %s911_s16  ;;  %s250_s27 = scalar_lea.vmem [#allocation2], %s910_s10 }
  0x4a   : > { %s257_s6 = sshll.u32 %s250_s27, 4  ;;  %p1572_p2 = pnand %p1149_p3, %p50_p5  ;;  %s1576_s6 = int_to_ptr.vmem [resolvable:$true] %s257_s6 }
  0x4b   : > { %s247_s11 = scalar_lea.sflag [#allocation3], %s246_s15  ;;  %s1264_s13 = scalar_lea.hbm %s1568_s25, 128 }
  0x4c   : > { %p1265_p11 = scmp.ne.s32.totalorder %s1568_s25, %s1264_s13  ;;  %p1266_p12 = pneg %p1572_p2 }
  0x4d   : > { %s1269_s16 = scalar_lea.hbm %s1684_s0, 256  ;;  %p1270_p4 = scmp.lt.u32.totalorder %s1568_s25, %s1684_s0 }
  0x4e   : > { %p1267_p0 = pnand %p1266_p12, %p1265_p11  ;;  %p1271_p13 = scmp.lt.u32.totalorder %s1269_s16, %s1264_s13 }
  0x4f   : > { %p1273_p10 = scmp.lt.u32.totalorder %s1264_s13, %s1568_s25 }
  0x50   : > { %p1268_p1 = pneg %p1267_p0  ;;  %p1272_p6 = por %p1271_p13, %p1270_p4 }
  0x52   : > { %p1274_p3 = por %p1273_p10, %p1272_p6 }
  0x54   : > { %p1275_p5 = pnand %p1274_p3, %p1268_p1 }
  0x56   : > { %1278 = shalt.err (!%p1275_p5)
}
  0x57   : > { %s1279_s15 = scalar_lea.vmem %s1576_s6, 128  ;;  %s1388_s27 = smov [#allocation2]  }
  0x58   : > { %p1280_p9 = scmp.ne.s32.totalorder %s1576_s6, %s1279_s15  ;;  %s1284_s8 = sshll.u32 %s1388_s27, 4  ;;  %s1285_s8 = int_to_ptr.vmem [resolvable:$false] %s1284_s8 }
  0x59   : > { %s1286_s10 = scalar_lea.vmem %s1285_s8, 256  ;;  %p1287_p7 = scmp.lt.s32.totalorder %s1576_s6, %s1285_s8 }
  0x5a   : > { %p1282_p11 = pnand %p1280_p9, %p1266_p12  ;;  %p1288_p4 = scmp.lt.s32.totalorder %s1286_s10, %s1279_s15 }
  0x5c   : > { %p1283_p0 = pneg %p1282_p11  ;;  %p1289_p13 = por %p1288_p4, %p1287_p7 }
  0x5e   : > { %p1290_p6 = pnand %p1289_p13, %p1283_p0 }
  0x60   : > { %1293 = shalt.err (!%p1290_p6)
}
  0x61   : > { %1142 = dma.hbm_to_vmem [thread:$0]  (!%p1572_p2), %s1568_s25, 128, %s1576_s6, %s247_s11  }
  0x62   : > { %266 = sbr.rel (%p1475_p8) target bundleno = 597 (0x255), region = 40  ;;  %s1606_s13 = sand.u32 (!%p1475_p8), 1, %s1364_s19  }
  0x63   : > { %s913_s16 = sshll.u32 (!%p1475_p8), %s1606_s13, 3  ;;  %s269_s24 = scalar_lea.sflag (!%p1475_p8), [#allocation3], %s1606_s13 }
  0x64   : > { %s1612_s7 = scalar_lea.vmem (!%p1475_p8), [#allocation2], %s913_s16  ;;  %p1702_p7 = scmp.ne.s32.totalorder (!%p1475_p8), %s1696_s28, 0 }
  0x69   : > { %1347 = dma.done.wait (%p1702_p7), %s269_s24, 128  }
  0x6a   : > { %1349 = vsyncadd (%p1702_p7), %s269_s24, 4294967168  ;;  %p1703_p2 = scmp.ne.s32.totalorder %s1694_s26, 0 }
  0x6c   : > { %1351 = dma.done.wait (%p1703_p2), [#allocation6], 16384  }
  0x6d   : > { %1353 = vsyncadd (%p1703_p2), [#allocation6], 4294950912  ;;  %v1389_v0 = vmov 0.0   ;;  %v325_v1 = vld [vmem:[#allocation5 + $0x8] sm:$0xff]  ;;  %v327_v3 = vld [vmem:[#allocation5 + $0x18] sm:$0xff]  ;;  %s919_s6 = sshll.u32 %s1372_s21, 7 }
  0x6e   : > { %538 = vmatprep.mubr.f32.mxu0 %v1389_v0  ;;  %609 = vmatprep.mubr.f32.mxu1 %v1389_v0  ;;  %v329_v2 = vld [vmem:[#allocation5 + $0x28] sm:$0xff]  ;;  %v331_v5 = vld [vmem:[#allocation5 + $0x38] sm:$0xff]  ;;  %v324_v6 = vld [vmem:[#allocation5] sm:$0xff]  ;;  %s310_s9 = scalar_lea.vmem [#allocation8], %s913_s16  ;;  %s1635_s8 = scalar_lea.hbm %s1689_s5, %s919_s6 }
  0x6f   : > { %v992_v4 = vpack.c.bf16 %v329_v2, %v325_v1  ;;  %v328_v7 = vld [vmem:[#allocation5 + $0x20] sm:$0xff]  ;;  %v1024_v8 = vpack.c.bf16 %v331_v5, %v327_v3  ;;  %v326_v10 = vld [vmem:[#allocation5 + $0x10] sm:$0xff]  ;;  %v333_v12 = vld [vmem:[#allocation5 + $0x48] sm:$0xff]  ;;  %s790_s11 = sshll.u32 %s310_s9, 4  ;;  %s777_s10 = scalar_lea.sflag [#allocation4], %s1606_s13  ;;  %s1637_s11 = int_to_ptr.vmem [resolvable:$true] %s790_s11 }
  0x70   : > { %v994_v9 = vpack.c.bf16 %v328_v7, %v324_v6  ;;  %v330_v11 = vld [vmem:[#allocation5 + $0x30] sm:$0xff]  ;;  %v337_v14 = vld [vmem:[#allocation5 + $0x68] sm:$0xff]  ;;  %v335_v15 = vld [vmem:[#allocation5 + $0x58] sm:$0xff]  ;;  %s1294_s24 = scalar_lea.vmem %s1637_s11, 128  ;;  %p1704_p12 = scmp.ne.s32.totalorder %s1700_s14, 0 }
  0x71   : > { %993 = vmatprep.subr.bf16.mxu0 %v992_v4  ;;  %v1026_v13 = vpack.c.bf16 %v330_v11, %v326_v10  ;;  %v339_v16 = vld [vmem:[#allocation5 + $0x78] sm:$0xff]  ;;  %1025 = vmatprep.subr.bf16.mxu1 %v1024_v8  ;;  %v996_v17 = vpack.c.bf16 %v337_v14, %v333_v12  ;;  %v332_v19 = vld [vmem:[#allocation5 + $0x40] sm:$0xff]  ;;  %v334_v21 = vld [vmem:[#allocation5 + $0x50] sm:$0xff]  ;;  %p1295_p8 = scmp.ne.s32.totalorder %s1637_s11, %s1294_s24  ;;  %s1390_s21 = smov [#allocation8]  }
  0x72   : > { %995 = vmatpush1.bf16.msra.mxu0 %v994_v9  ;;  %v1028_v18 = vpack.c.bf16 %v339_v16, %v335_v15  ;;  %v336_v20 = vld [vmem:[#allocation5 + $0x60] sm:$0xff]  ;;  %v338_v23 = vld [vmem:[#allocation5 + $0x70] sm:$0xff]  ;;  %v341_v24 = vld [vmem:[#allocation5 + $0x88] sm:$0xff]  ;;  %s1298_s16 = sshll.u32 %s1390_s21, 4  ;;  %s1299_s16 = int_to_ptr.vmem [resolvable:$false] %s1298_s16 }
  0x73   : > { %1027 = vmatpush1.bf16.msra.mxu1 %v1026_v13  ;;  %v998_v22 = vpack.c.bf16 %v336_v20, %v332_v19  ;;  %v345_v25 = vld [vmem:[#allocation5 + $0xa8] sm:$0xff]  ;;  %997 = vmatprep.subr.bf16.mxu0 %v996_v17  ;;  %v1030_v26 = vpack.c.bf16 %v338_v23, %v334_v21  ;;  %v343_v28 = vld [vmem:[#allocation5 + $0x98] sm:$0xff]  ;;  %v340_v30 = vld [vmem:[#allocation5 + $0x80] sm:$0xff]  ;;  %p1296_p1 = pnand %p1295_p8, %p1704_p12  ;;  %p1301_p3 = scmp.lt.s32.totalorder %s1637_s11, %s1299_s16 }
  0x74   : > { %1029 = vmatprep.subr.bf16.mxu1 %v1028_v18  ;;  %v1000_v27 = vpack.c.bf16 %v345_v25, %v341_v24  ;;  %v347_v29 = vld [vmem:[#allocation5 + $0xb8] sm:$0xff]  ;;  %v344_v32 = vld [vmem:[#allocation5 + $0xa0] sm:$0xff]  ;;  %v342_v33 = vld [vmem:[#allocation5 + $0x90] sm:$0xff] }
  0x75   : > { %v1032_v31 = vpack.c.bf16 %v347_v29, %v343_v28  ;;  %v346_v34 = vld [vmem:[#allocation5 + $0xb0] sm:$0xff]  ;;  %v1002_v35 = vpack.c.bf16 %v344_v32, %v340_v30  ;;  %v349_v36 = vld [vmem:[#allocation5 + $0xc8] sm:$0xff]  ;;  %v351_v38 = vld [vmem:[#allocation5 + $0xd8] sm:$0xff]  ;;  %p1297_p10 = pneg %p1296_p1 }
  0x76   : > { %999 = vmatpush1.bf16.msra.mxu0 %v998_v22  ;;  %v353_v37 = vld [vmem:[#allocation5 + $0xe8] sm:$0xff]  ;;  %v1034_v39 = vpack.c.bf16 %v346_v34, %v342_v33  ;;  %v355_v41 = vld [vmem:[#allocation5 + $0xf8] sm:$0xff]  ;;  %v348_v42 = vld [vmem:[#allocation5 + $0xc0] sm:$0xff] }
  0x77   : > { %1031 = vmatpush1.bf16.msra.mxu1 %v1030_v26  ;;  %1001 = vmatprep.subr.bf16.mxu0 %v1000_v27  ;;  %v1004_v40 = vpack.c.bf16 %v353_v37, %v349_v36  ;;  %v352_v43 = vld [vmem:[#allocation5 + $0xe0] sm:$0xff]  ;;  %v1036_v44 = vpack.c.bf16 %v355_v41, %v351_v38  ;;  %v350_v45 = vld [vmem:[#allocation5 + $0xd0] sm:$0xff]  ;;  %v357_v47 = vld [vmem:[#allocation5 + $0x108] sm:$0xff] }
  0x78   : > { %1033 = vmatprep.subr.bf16.mxu1 %v1032_v31  ;;  %v354_v46 = vld [vmem:[#allocation5 + $0xf0] sm:$0xff]  ;;  %v361_v48 = vld [vmem:[#allocation5 + $0x128] sm:$0xff]  ;;  %v359_v49 = vld [vmem:[#allocation5 + $0x118] sm:$0xff]  ;;  %v1006_v51 = vpack.c.bf16 %v352_v43, %v348_v42 }
  0x79   : > { %v363_v50 = vld [vmem:[#allocation5 + $0x138] sm:$0xff]  ;;  %v1038_v52 = vpack.c.bf16 %v354_v46, %v350_v45  ;;  %v1008_v53 = vpack.c.bf16 %v361_v48, %v357_v47  ;;  %v356_v54 = vld [vmem:[#allocation5 + $0x100] sm:$0xff]  ;;  %v358_v56 = vld [vmem:[#allocation5 + $0x110] sm:$0xff] }
  0x7a   : > { %1003 = vmatpush1.bf16.msra.mxu0 %v1002_v35  ;;  %v360_v55 = vld [vmem:[#allocation5 + $0x120] sm:$0xff]  ;;  %v1040_v57 = vpack.c.bf16 %v363_v50, %v359_v49  ;;  %v362_v58 = vld [vmem:[#allocation5 + $0x130] sm:$0xff]  ;;  %v365_v59 = vld [vmem:[#allocation5 + $0x148] sm:$0xff] }
  0x7b   : > { %1035 = vmatpush1.bf16.msra.mxu1 %v1034_v39  ;;  %1005 = vmatprep.subr.bf16.mxu0 %v1004_v40  ;;  %v369_v60 = vld [vmem:[#allocation5 + $0x168] sm:$0xff]  ;;  %v367_v61 = vld [vmem:[#allocation5 + $0x158] sm:$0xff]  ;;  %v1010_v63 = vpack.c.bf16 %v360_v55, %v356_v54  ;;  %v1042_v0 = vpack.c.bf16 %v362_v58, %v358_v56  ;;  %v364_v2 = vld [vmem:[#allocation5 + $0x140] sm:$0xff] }
  0x7c   : > { %1037 = vmatprep.subr.bf16.mxu1 %v1036_v44  ;;  %v371_v62 = vld [vmem:[#allocation5 + $0x178] sm:$0xff]  ;;  %v1012_v1 = vpack.c.bf16 %v369_v60, %v365_v59  ;;  %v368_v3 = vld [vmem:[#allocation5 + $0x160] sm:$0xff]  ;;  %v366_v4 = vld [vmem:[#allocation5 + $0x150] sm:$0xff] }
  0x7d   : > { %v1044_v5 = vpack.c.bf16 %v371_v62, %v367_v61  ;;  %v370_v6 = vld [vmem:[#allocation5 + $0x170] sm:$0xff]  ;;  %v373_v7 = vld [vmem:[#allocation5 + $0x188] sm:$0xff]  ;;  %v375_v9 = vld [vmem:[#allocation5 + $0x198] sm:$0xff]  ;;  %v1014_v11 = vpack.c.bf16 %v368_v3, %v364_v2 }
  0x7e   : > { %1007 = vmatpush1.bf16.msra.mxu0 %v1006_v51  ;;  %v377_v8 = vld [vmem:[#allocation5 + $0x1a8] sm:$0xff]  ;;  %v379_v10 = vld [vmem:[#allocation5 + $0x1b8] sm:$0xff]  ;;  %v1046_v12 = vpack.c.bf16 %v370_v6, %v366_v4  ;;  %v372_v14 = vld [vmem:[#allocation5 + $0x180] sm:$0xff] }
  0x7f   : > { %1039 = vmatpush1.bf16.msra.mxu1 %v1038_v52  ;;  %1009 = vmatprep.subr.bf16.mxu0 %v1008_v53  ;;  %v1016_v13 = vpack.c.bf16 %v377_v8, %v373_v7  ;;  %v376_v15 = vld [vmem:[#allocation5 + $0x1a0] sm:$0xff]  ;;  %v374_v16 = vld [vmem:[#allocation5 + $0x190] sm:$0xff]  ;;  %v1048_v17 = vpack.c.bf16 %v379_v10, %v375_v9  ;;  %v381_v19 = vld [vmem:[#allocation5 + $0x1c8] sm:$0xff] }
  0x80   : > { %1041 = vmatprep.subr.bf16.mxu1 %v1040_v57  ;;  %v378_v18 = vld [vmem:[#allocation5 + $0x1b0] sm:$0xff]  ;;  %v385_v20 = vld [vmem:[#allocation5 + $0x1e8] sm:$0xff]  ;;  %v383_v21 = vld [vmem:[#allocation5 + $0x1d8] sm:$0xff]  ;;  %v1018_v23 = vpack.c.bf16 %v376_v15, %v372_v14 }
  0x81   : > { %v387_v22 = vld [vmem:[#allocation5 + $0x1f8] sm:$0xff]  ;;  %v1050_v24 = vpack.c.bf16 %v378_v18, %v374_v16  ;;  %v1020_v25 = vpack.c.bf16 %v385_v20, %v381_v19  ;;  %v380_v26 = vld [vmem:[#allocation5 + $0x1c0] sm:$0xff]  ;;  %v382_v28 = vld [vmem:[#allocation5 + $0x1d0] sm:$0xff] }
  0x82   : > { %1011 = vmatpush1.bf16.msra.mxu0 %v1010_v63  ;;  %v384_v27 = vld [vmem:[#allocation5 + $0x1e0] sm:$0xff]  ;;  %v1052_v29 = vpack.c.bf16 %v387_v22, %v383_v21  ;;  %v386_v30 = vld [vmem:[#allocation5 + $0x1f0] sm:$0xff]  ;;  %v405_v32 = vld [vmem:[#allocation7 + $0x88] sm:$0xff] }
  0x83   : > { %1043 = vmatpush1.bf16.msra.mxu1 %v1042_v0  ;;  %1013 = vmatprep.subr.bf16.mxu0 %v1012_v1  ;;  %v404_v31 = vld [vmem:[#allocation7 + $0x80] sm:$0xff]  ;;  %v437_v34 = vld [vmem:[#allocation7 + $0x188] sm:$0xff]  ;;  %v1022_v35 = vpack.c.bf16 %v384_v27, %v380_v26  ;;  %v1054_v36 = vpack.c.bf16 %v386_v30, %v382_v28  ;;  %v406_v43 = vld [vmem:[#allocation7 + $0x90] sm:$0xff] }
  0x84   : > { %1045 = vmatprep.subr.bf16.mxu1 %v1044_v5  ;;  %v436_v33 = vld [vmem:[#allocation7 + $0x180] sm:$0xff]  ;;  %v1056_v37 = vpack.c.bf16 %v405_v32, %v404_v31  ;;  %v389_v39 = vld [vmem:[#allocation7 + $0x8] sm:$0xff]  ;;  %v407_v44 = vld [vmem:[#allocation7 + $0x98] sm:$0xff] }
  0x85   : > { %v388_v38 = vld [vmem:[#allocation7] sm:$0xff]  ;;  %v1088_v41 = vpack.c.bf16 %v437_v34, %v436_v33  ;;  %v421_v42 = vld [vmem:[#allocation7 + $0x108] sm:$0xff]  ;;  %v438_v45 = vld [vmem:[#allocation7 + $0x190] sm:$0xff]  ;;  %v1060_v50 = vpack.c.bf16 %v407_v44, %v406_v43 }
  0x86   : > { %1015 = vmatpush1.bf16.msra.mxu0 %v1014_v11  ;;  %v420_v40 = vld [vmem:[#allocation7 + $0x100] sm:$0xff]  ;;  %v439_v46 = vld [vmem:[#allocation7 + $0x198] sm:$0xff]  ;;  %v1058_v48 = vpack.c.bf16 %v389_v39, %v388_v38  ;;  %v390_v51 = vld [vmem:[#allocation7 + $0x10] sm:$0xff] }
  0x87   : > { %1047 = vmatpush1.bf16.msra.mxu1 %v1046_v12  ;;  %1017 = vmatprep.subr.bf16.mxu0 %v1016_v13  ;;  %v323_v47 = vld [vmem:[%s1612_s7] sm:$0xff]  ;;  %v1090_v49 = vpack.c.bf16 %v421_v42, %v420_v40  ;;  %v1092_v54 = vpack.c.bf16 %v439_v46, %v438_v45  ;;  %v408_v56 = vld [vmem:[#allocation7 + $0xa0] sm:$0xff]  ;;  %v409_v57 = vld [vmem:[#allocation7 + $0xa8] sm:$0xff]  ;;  %s1300_s7 = scalar_lea.vmem %s1299_s16, 256 }
  0x88   : > { %1049 = vmatprep.subr.bf16.mxu1 %v1048_v17  ;;  %v391_v52 = vld [vmem:[#allocation7 + $0x18] sm:$0xff]  ;;  %v422_v53 = vld [vmem:[#allocation7 + $0x110] sm:$0xff]  ;;  %v440_v58 = vld [vmem:[#allocation7 + $0x1a0] sm:$0xff]  ;;  %v1064_v62 = vpack.c.bf16 %v409_v57, %v408_v56  ;;  %p1302_p5 = scmp.lt.s32.totalorder %s1300_s7, %s1294_s24 }
  0x89   : > { %v423_v55 = vld [vmem:[#allocation7 + $0x118] sm:$0xff]  ;;  %v441_v59 = vld [vmem:[#allocation7 + $0x1a8] sm:$0xff]  ;;  %v1062_v60 = vpack.c.bf16 %v391_v52, %v390_v51  ;;  %v392_v63 = vld [vmem:[#allocation7 + $0x20] sm:$0xff] }
  0x8a   : > { %1019 = vmatpush1.bf16.msra.mxu0 %v1018_v23  ;;  %v1094_v61 = vpack.c.bf16 %v423_v55, %v422_v53  ;;  %v393_v0 = vld [vmem:[#allocation7 + $0x28] sm:$0xff]  ;;  %v424_v1 = vld [vmem:[#allocation7 + $0x120] sm:$0xff]  ;;  %v1096_v2 = vpack.c.bf16 %v441_v59, %v440_v58  ;;  %v410_v4 = vld [vmem:[#allocation7 + $0xb0] sm:$0xff]  ;;  %p1303_p9 = por %p1302_p5, %p1301_p3 }
  0x8b   : > { %1051 = vmatpush1.bf16.msra.mxu1 %v1050_v24  ;;  %1021 = vmatprep.subr.bf16.mxu0 %v1020_v25  ;;  %v425_v3 = vld [vmem:[#allocation7 + $0x128] sm:$0xff]  ;;  %v411_v5 = vld [vmem:[#allocation7 + $0xb8] sm:$0xff]  ;;  %v442_v6 = vld [vmem:[#allocation7 + $0x1b0] sm:$0xff]  ;;  %v1066_v8 = vpack.c.bf16 %v393_v0, %v392_v63 }
  0x8c   : > { %1053 = vmatprep.subr.bf16.mxu1 %v1052_v29  ;;  %v443_v7 = vld [vmem:[#allocation7 + $0x1b8] sm:$0xff]  ;;  %v1098_v9 = vpack.c.bf16 %v425_v3, %v424_v1  ;;  %v1068_v10 = vpack.c.bf16 %v411_v5, %v410_v4  ;;  %v394_v11 = vld [vmem:[#allocation7 + $0x30] sm:$0xff]  ;;  %v412_v16 = vld [vmem:[#allocation7 + $0xc0] sm:$0xff]  ;;  %p1304_p11 = pnand %p1303_p9, %p1297_p10 }
  0x8d   : > { %v395_v12 = vld [vmem:[#allocation7 + $0x38] sm:$0xff]  ;;  %v426_v13 = vld [vmem:[#allocation7 + $0x130] sm:$0xff]  ;;  %v1100_v14 = vpack.c.bf16 %v443_v7, %v442_v6  ;;  %v413_v17 = vld [vmem:[#allocation7 + $0xc8] sm:$0xff] }
  0x8e   : > { %1023 = vmatpush1.bf16.msra.mxu0 %v1022_v35  ;;  %v427_v15 = vld [vmem:[#allocation7 + $0x138] sm:$0xff]  ;;  %v444_v18 = vld [vmem:[#allocation7 + $0x1c0] sm:$0xff]  ;;  %v445_v19 = vld [vmem:[#allocation7 + $0x1c8] sm:$0xff]  ;;  %v1070_v20 = vpack.c.bf16 %v395_v12, %v394_v11  ;;  %v1072_v22 = vpack.c.bf16 %v413_v17, %v412_v16 }
  0x8f   : > { %1055 = vmatpush1.bf16.msra.mxu1 %v1054_v36  ;;  %1057 = vmatprep.subr.bf16.mxu0 %v1056_v37  ;;  %v1102_v21 = vpack.c.bf16 %v427_v15, %v426_v13  ;;  %v396_v23 = vld [vmem:[#allocation7 + $0x40] sm:$0xff]  ;;  %v397_v24 = vld [vmem:[#allocation7 + $0x48] sm:$0xff]  ;;  %v1104_v26 = vpack.c.bf16 %v445_v19, %v444_v18  ;;  %v414_v28 = vld [vmem:[#allocation7 + $0xd0] sm:$0xff] }
  0x90   : > { %1089 = vmatprep.subr.bf16.mxu1 %v1088_v41  ;;  %v428_v25 = vld [vmem:[#allocation7 + $0x140] sm:$0xff]  ;;  %v429_v27 = vld [vmem:[#allocation7 + $0x148] sm:$0xff]  ;;  %v415_v29 = vld [vmem:[#allocation7 + $0xd8] sm:$0xff]  ;;  %v1074_v32 = vpack.c.bf16 %v397_v24, %v396_v23 }
  0x91   : > { %539 = vmatmul.mubr.f32.vlgmr.msra.gmra.mrb[0].mxu0 %v323_v47  ;;  %v446_v30 = vld [vmem:[#allocation7 + $0x1d0] sm:$0xff]  ;;  %v447_v31 = vld [vmem:[#allocation7 + $0x1d8] sm:$0xff]  ;;  %v1106_v33 = vpack.c.bf16 %v429_v27, %v428_v25  ;;  %v1076_v34 = vpack.c.bf16 %v415_v29, %v414_v28  ;;  %v416_v40 = vld [vmem:[#allocation7 + $0xe0] sm:$0xff] }
  0x92   : > { %610 = vmatmul.mubr.f32.vlgmr.msra.gmra.mrb[0].mxu1 %v323_v47  ;;  %1059 = vmatpush3.bf16.msra.mxu0 %v1058_v48  ;;  %v398_v35 = vld [vmem:[#allocation7 + $0x50] sm:$0xff]  ;;  %v399_v36 = vld [vmem:[#allocation7 + $0x58] sm:$0xff]  ;;  %v1108_v38 = vpack.c.bf16 %v447_v31, %v446_v30  ;;  %v417_v41 = vld [vmem:[#allocation7 + $0xe8] sm:$0xff] }
  0x93   : > { %1091 = vmatpush3.bf16.msra.mxu1 %v1090_v49  ;;  %1061 = vmatprep.subr.bf16.mxu0 %v1060_v50  ;;  %v430_v37 = vld [vmem:[#allocation7 + $0x150] sm:$0xff]  ;;  %v431_v39 = vld [vmem:[#allocation7 + $0x158] sm:$0xff]  ;;  %v448_v42 = vld [vmem:[#allocation7 + $0x1e0] sm:$0xff]  ;;  %v1078_v44 = vpack.c.bf16 %v399_v36, %v398_v35  ;;  %v1080_v46 = vpack.c.bf16 %v417_v41, %v416_v40 }
  0x94   : > { %1093 = vmatprep.subr.bf16.mxu1 %v1092_v54  ;;  %v449_v43 = vld [vmem:[#allocation7 + $0x1e8] sm:$0xff]  ;;  %v1110_v45 = vpack.c.bf16 %v431_v39, %v430_v37  ;;  %v400_v48 = vld [vmem:[#allocation7 + $0x60] sm:$0xff]  ;;  %v418_v54 = vld [vmem:[#allocation7 + $0xf0] sm:$0xff] }
  0x95   : > { %v1112_v47 = vpack.c.bf16 %v449_v43, %v448_v42  ;;  %v401_v49 = vld [vmem:[#allocation7 + $0x68] sm:$0xff]  ;;  %v432_v50 = vld [vmem:[#allocation7 + $0x160] sm:$0xff]  ;;  %v419_v55 = vld [vmem:[#allocation7 + $0xf8] sm:$0xff] }
  0x96   : > { %1063 = vmatpush3.bf16.msra.mxu0 %v1062_v60  ;;  %v1082_v51 = vpack.c.bf16 %v401_v49, %v400_v48  ;;  %v433_v52 = vld [vmem:[#allocation7 + $0x168] sm:$0xff]  ;;  %v450_v56 = vld [vmem:[#allocation7 + $0x1f0] sm:$0xff]  ;;  %v1084_v57 = vpack.c.bf16 %v419_v55, %v418_v54  ;;  %v451_v58 = vld [vmem:[#allocation7 + $0x1f8] sm:$0xff] }
  0x97   : > { %1095 = vmatpush3.bf16.msra.mxu1 %v1094_v61  ;;  %1065 = vmatprep.subr.bf16.mxu0 %v1064_v62  ;;  %v1114_v53 = vpack.c.bf16 %v433_v52, %v432_v50  ;;  %v402_v59 = vld [vmem:[#allocation7 + $0x70] sm:$0xff]  ;;  %v403_v60 = vld [vmem:[#allocation7 + $0x78] sm:$0xff]  ;;  %v1116_v61 = vpack.c.bf16 %v451_v58, %v450_v56 }
  0x98   : > { %1097 = vmatprep.subr.bf16.mxu1 %v1096_v2  ;;  %v1086_v62 = vpack.c.bf16 %v403_v60, %v402_v59  ;;  %v434_v63 = vld [vmem:[#allocation7 + $0x170] sm:$0xff]  ;;  %v435_v0 = vld [vmem:[#allocation7 + $0x178] sm:$0xff]  ;;  %v454_v2 = vlaneseq }
  0x99   : > { %v1118_v1 = vpack.c.bf16 %v435_v0, %v434_v63  ;;  %v452_v5 = vld [vmem:[%s1686_s2] sm:$0xf] }
  0x9a   : > { %1067 = vmatpush3.bf16.msra.mxu0 %v1066_v8  ;;  %v455_v3 = vshrl.u32 %v454_v2, 7 }
  0x9b   : > { %1099 = vmatpush3.bf16.msra.mxu1 %v1098_v9  ;;  %1069 = vmatprep.subr.bf16.mxu0 %v1068_v10 }
  0x9c   : > { %1101 = vmatprep.subr.bf16.mxu1 %v1100_v14  ;;  %v456_v4 = vsub.s32 0, %v455_v3  ;;  %v464_v6 = vsub.s32 2, %v455_v3  ;;  %v460_v7 = vsub.s32 1, %v455_v3  ;;  %v468_v8 = vsub.s32 3, %v455_v3 }
  0x9e   : > { %1071 = vmatpush3.bf16.msra.mxu0 %v1070_v20  ;;  %v457_v9 = vrot.slane %v452_v5, %v456_v4  ;;  %v465_v10 = vrot.slane %v452_v5, %v464_v6  ;;  %v461_v11 = vrot.slane %v452_v5, %v460_v7  ;;  %v469_v12 = vrot.slane %v452_v5, %v468_v8 }
  0x9f   : > { %1103 = vmatpush3.bf16.msra.mxu1 %v1102_v21  ;;  %1073 = vmatprep.subr.bf16.mxu0 %v1072_v22 }
  0xa0   : > { %1105 = vmatprep.subr.bf16.mxu1 %v1104_v26 }
  0xa2   : > { %1075 = vmatpush3.bf16.msra.mxu0 %v1074_v32  ;;  %v917_v32 = vld [vmem:[%s1688_s4] ss:$0 sm:$0xff] }
  0xa3   : > { %1107 = vmatpush3.bf16.msra.mxu1 %v1106_v33  ;;  %1077 = vmatprep.subr.bf16.mxu0 %v1076_v34 }
  0xa4   : > { %1109 = vmatprep.subr.bf16.mxu1 %v1108_v38 }
  0xa6   : > { %1079 = vmatpush3.bf16.msra.mxu0 %v1078_v44 }
  0xa7   : > { %1111 = vmatpush3.bf16.msra.mxu1 %v1110_v45  ;;  %1081 = vmatprep.subr.bf16.mxu0 %v1080_v46 }
  0xa8   : > { %1113 = vmatprep.subr.bf16.mxu1 %v1112_v47 }
  0xaa   : > { %1083 = vmatpush3.bf16.msra.mxu0 %v1082_v51 }
  0xab   : > { %1115 = vmatpush3.bf16.msra.mxu1 %v1114_v53  ;;  %1085 = vmatprep.subr.bf16.mxu0 %v1084_v57 }
  0xac   : > { %1117 = vmatprep.subr.bf16.mxu1 %v1116_v61 }
  0xae   : > { %1087 = vmatpush3.bf16.msra.mxu0 %v1086_v62 }
  0xaf   : > { %1119 = vmatpush3.bf16.msra.mxu1 %v1118_v1 }
 0x164   : > { %v540_v13 = vpop.f32.mrb[0].mxu0 }
 0x165   : > { %v541_v14 = vadd.f32 %v540_v13, %v457_v9  ;;  %v611_v15 = vpop.f32.mrb[0].mxu1  ;;  %v542_v16 = vpop.f32.mrb[1].mxu0 }
 0x166   : > { %v612_v17 = vadd.f32 %v611_v15, %v465_v10  ;;  %v543_v18 = vadd.f32 %v542_v16, %v461_v11  ;;  %v613_v19 = vpop.f32.mrb[1].mxu1 }
 0x167   : > { %v614_v20 = vadd.f32 %v613_v19, %v469_v12  ;;  %v616_v22 = vmax.f32 %v541_v14, 0.0 }
 0x168   : > { %v617_v21 = vmax.f32 %v543_v18, 0.0  ;;  %v618_v24 = vmax.f32 %v612_v17, 0.0 }
 0x169   : > { %v619_v23 = vmax.f32 %v614_v20, 0.0 }
 0x16a   : > { %685 = vmatprep.mubr.f32.mxu0 %v617_v21 }
 0x16b   : > { %755 = vmatprep.mubr.f32.mxu1 %v619_v23  ;;  %686 = vmatmul.mubr.f32.vlgmr.msra.gmra.mrb[2].mxu0 %v616_v22 }
 0x16c   : > { %756 = vmatmul.mubr.f32.vlgmr.msra.gmra.mrb[2].mxu1 %v618_v24 }
 0x23e   : > { %v954_v25 = vpop.f32.mrb[2].mxu0 }
 0x23f   : > { %v989_v26 = vpop.f32.mrb[2].mxu1  ;;  %v955_v27 = vpop.f32.mrb[3].mxu0 }
 0x240   : > { %v956_v28 = vadd.f32 %v955_v27, %v954_v25  ;;  %v990_v29 = vpop.f32.mrb[3].mxu1 }
 0x241   : > { %v991_v30 = vadd.f32 %v990_v29, %v989_v26 }
 0x243   : > { %v758_v31 = vadd.f32 %v991_v30, %v956_v28 }
 0x245   : > { %v774_v33 = vadd.f32 %v917_v32, %v758_v31 }
 0x247   : > { %775 = vst [vmem:[%s310_s9] sm:$0xff] %v774_v33 }
 0x248   : > { %1307 = shalt.err (!%p1304_p11)
}
 0x249   : > { %s1308_s13 = scalar_lea.hbm %s1635_s8, 128  ;;  %s1312_s30 = scalar_lea.hbm %s1689_s5, 256 }
 0x24a   : > { %p1309_p0 = scmp.ne.s32.totalorder %s1635_s8, %s1308_s13  ;;  %p1313_p6 = scmp.lt.u32.totalorder %s1635_s8, %s1689_s5 }
 0x24b   : > { %p1314_p7 = scmp.lt.u32.totalorder %s1312_s30, %s1308_s13  ;;  %p1316_p8 = scmp.lt.u32.totalorder %s1308_s13, %s1635_s8 }
 0x24c   : > { %p1310_p4 = pnand %p1309_p0, %p1704_p12 }
 0x24d   : > { %p1315_p2 = por %p1314_p7, %p1313_p6 }
 0x24e   : > { %p1311_p13 = pneg %p1310_p4 }
 0x24f   : > { %p1317_p1 = por %p1316_p8, %p1315_p2 }
 0x251   : > { %p1318_p10 = pnand %p1317_p1, %p1311_p13 }
 0x253   : > { %1321 = shalt.err (!%p1318_p10)
}
 0x254   : > { %1130 = dma.vmem_to_hbm [thread:$0]  (%p1704_p12), %s1637_s11, 128, %s1635_s8, %s777_s10  }
 0x255 PF: > { %s802_s9 = sand.u32 1, %s1360_s18   ;;  %p1705_p3 = scmp.ne.s32.totalorder %s1697_s29, 0 }
 0x256   : > { %p1706_p5 = scmp.ge.s32.totalorder %s1380_s23, 2  ;;  %s803_s15 = scalar_lea.sflag [#allocation4], %s802_s9 }
 0x258   : > { %p1144_p9 = pnand %p1706_p5, %p1705_p3 }
 0x25a   : > { %1355 = dma.done.wait (!%p1144_p9), %s803_s15, 128  }
 0x25b   : > { %1357 = vsyncadd (!%p1144_p9), %s803_s15, 4294967168  ;;  %s22_s23 = sadd.s32 1, %s1380_s23   ;;  %s1707_s18 = smov %s1364_s19 }
 0x25c   : > { %p19_p11 = scmp.ge.s32.totalorder %s22_s23, 4   ;;  %s1708_s19 = smov %s1368_s20 }
 0x25d   : > { %s1709_s20 = smov %s1563_s17  ;;  %s1710_s21 = smov %s1376_s22 }
 0x25e   : > { %s1711_s22 = smov %s1713_s12  ;;  %21 = sbr.rel (!%p19_p11) target bundleno = 7 (0x7), region = 106 }
 0x265   :  { %808 = vsyncpa [#allocation3], 1 }
 0x266   :  { %810 = vsyncpa [#allocation3 + $0x1], 1 }
 0x267   :  { %811 = vsyncpa [#allocation6], 1 }
 0x268   :  { %812 = vsyncpa [#allocation4], 1 }
 0x269   :  { %814 = vsyncpa [#allocation4 + $0x1], 1 }

</bundles_post_ra>
